<compile_context>
chip_gen: v5e
topology: v5e:2x2
jax: 0.10.0
libtpu: 0.0.40
codegen_flags: <defaults>
</compile_context>

<pallas_src>
import functools

import jax
import jax.numpy as jnp
from jax.experimental import pallas as pl
from jax.experimental.pallas import tpu as pltpu


def _round_up(x, m):
    return ((x + m - 1) // m) * m


def _ce_label_smooth_kernel(
    logits_ref, targets_ref, out_ref, *,
    epsilon, num_classes, n_rows, block_rows,
):
    """One grid step: write this tile's partial loss sum into out_ref."""
    pid = pl.program_id(0)

    x = logits_ref[...].astype(jnp.float32)            # (TN, C)
    t = targets_ref[...]                                # (TN, 1) int32

    # Numerically stable per-row log-sum-exp.
    m = jnp.max(x, axis=1, keepdims=True)                               # (TN, 1)
    log_z = m + jnp.log(jnp.sum(jnp.exp(x - m), axis=1, keepdims=True))  # (TN, 1)

    # Fused smoothed-label weighted reduction (single compare + mul + reduce):
    #   loss_n = logZ_n - sum_c w_{n,c} * x_{n,c}
    #   w_{n,c} = eps/C + (1-eps) * [c == target_n]   (sums to 1 per row)
    base = jnp.float32(epsilon / num_classes)
    hit = jnp.float32(1.0 - epsilon + epsilon / num_classes)
    cls_ids = jax.lax.broadcasted_iota(jnp.int32, x.shape, 1)            # (TN, C)
    w = jnp.where(cls_ids == t, hit, base)
    weighted = jnp.sum(w * x, axis=1, keepdims=True)                     # (TN, 1)

    per_row = log_z - weighted                                           # (TN, 1)

    # Ragged last tile: zero rows >= N via a select. Select does not propagate
    # NaN/Inf from stale padding rows (do NOT replace with per_row * mask).
    row_ids = jax.lax.broadcasted_iota(jnp.int32, (block_rows, 1), 0) + pid * block_rows
    per_row = jnp.where(row_ids < n_rows, per_row, 0.0)

    tile_sum = jnp.sum(per_row)                                          # scalar f32
    out_ref[...] = jnp.broadcast_to(tile_sum, out_ref.shape).astype(jnp.float32)


def cross_entropy_label_smooth(logits, targets, *, num_classes, epsilon=0.1,
                               block_rows=1024):
    """logits: (N, C) float (any dtype), targets: (N,) int -> scalar f32 loss."""
    n, c = logits.shape
    assert c == num_classes

    # Row tile: as large as requested, capped at the batch, rounded DOWN to
    # the dtype's sublane-packing multiple (f32: 8, bf16: 16, int8/fp8: 32)
    # so bf16 loads stay packed and unmasked.
    itemsize = jnp.dtype(logits.dtype).itemsize
    sublane = {4: 8, 2: 16, 1: 32}.get(itemsize, 8)
    block_rows = min(int(block_rows), n)
    block_rows = (block_rows // sublane) * sublane
    if block_rows == 0:
        block_rows = n                      # tiny batch: single full-array tile
    n_tiles = pl.cdiv(n, block_rows)

    targets_2d = targets.astype(jnp.int32).reshape(n, 1)

    kernel = functools.partial(
        _ce_label_smooth_kernel,
        epsilon=float(epsilon),
        num_classes=int(num_classes),
        n_rows=int(n),
        block_rows=int(block_rows),
    )

    # Double-buffered VMEM estimate; raise the scoped limit only when the tile
    # is big enough to matter (v5e's default scoped limit is 16 MiB).
    vmem_est = 2 * block_rows * c * itemsize + 2 * block_rows * 128 * 4
    cp_kwargs = dict(dimension_semantics=("parallel",))
    if vmem_est > 12 * 1024 * 1024:
        cp_kwargs["vmem_limit_bytes"] = min(int(vmem_est * 3 // 2), 64 * 1024 * 1024)

    partials = pl.pallas_call(
        kernel,
        # Per-tile partial sums in an (n_tiles, 8, 128) f32 slab so each grid
        # step owns an aligned, independent output block (parallel axis ->
        # megacore shardable on v7x). Only [:, 0, 0] is consumed.
        out_shape=jax.ShapeDtypeStruct((n_tiles, 8, 128), jnp.float32),
        grid=(n_tiles,),
        in_specs=[
            # Logits tiled along rows; full class dim (C need not be 128-mult).
            pl.BlockSpec((block_rows, c), lambda i: (i, 0)),
            # Targets tiled with the same row grid.
            pl.BlockSpec((block_rows, 1), lambda i: (i, 0)),
        ],
        out_specs=pl.BlockSpec((1, 8, 128), lambda i: (i, 0, 0)),
        compiler_params=pltpu.CompilerParams(**cp_kwargs),
    )(logits, targets_2d)   # native dtype; upcast happens in-kernel

    # Tiny final reduction + mean(0) scale on the host side (n_tiles scalars).
    return jnp.sum(partials[:, 0, 0]) * (1.0 / float(n))


def _reference(logits, targets, *, num_classes, epsilon=0.1):
    log_probs = jax.nn.log_softmax(logits.astype(jnp.float32), axis=1)
    onehot = jax.nn.one_hot(targets, num_classes, dtype=jnp.float32)
    smoothed = (1.0 - epsilon) * onehot + epsilon / num_classes
    return (-smoothed * log_probs).mean(0).sum()


if __name__ == "__main__":
    num_classes = 1000
    batch = 40

    key = jax.random.PRNGKey(0)
    k1, k2 = jax.random.split(key)
    logits = jax.random.normal(k1, (batch, num_classes), dtype=jnp.float32)
    targets = jax.random.randint(k2, (batch,), 0, num_classes, dtype=jnp.int32)

    # Default tiling (single 40-row tile).
    loss = jax.block_until_ready(
        cross_entropy_label_smooth(logits, targets, num_classes=num_classes, epsilon=0.1))
    # Small tiles: exercises the multi-tile path and the ragged last tile.
    loss_small = jax.block_until_ready(
        cross_entropy_label_smooth(logits, targets, num_classes=num_classes,
                                   epsilon=0.1, block_rows=16))

    ref = _reference(logits, targets, num_classes=num_classes, epsilon=0.1)
    assert jnp.allclose(loss, ref, rtol=1e-5, atol=1e-5), (loss, ref)
    assert jnp.allclose(loss_small, ref, rtol=1e-5, atol=1e-5), (loss_small, ref)

    # bf16-input path (native-dtype streaming, in-kernel f32 upcast).
    logits_bf16 = logits.astype(jnp.bfloat16)
    loss_bf16 = jax.block_until_ready(
        cross_entropy_label_smooth(logits_bf16, targets, num_classes=num_classes,
                                   epsilon=0.1, block_rows=16))
    ref_bf16 = _reference(logits_bf16.astype(jnp.float32), targets,
                          num_classes=num_classes, epsilon=0.1)
    assert jnp.allclose(loss_bf16, ref_bf16, rtol=1e-4, atol=1e-4), (loss_bf16, ref_bf16)

    print("KERNEL_OK")
</pallas_src>

<mosaic_0001>
module attributes {stable_mosaic.version = 11 : i64} {
  func.func @_ce_label_smooth_kernel(%arg0: i32, %arg1: memref<40x1000xf32, #tpu.memory_space<vmem>>, %arg2: memref<40x1xi32, #tpu.memory_space<vmem>>, %arg3: memref<1x8x128xf32, #tpu.memory_space<vmem>>) attributes {dimension_semantics = [#tpu.dimension_semantics<parallel>], iteration_bounds = array<i64: 1>, scalar_prefetch = 0 : i64, scratch_operands = 0 : i64, tpu.core_type = #tpu.core_type<tc>, window_params = [{transform_indices = @transform_0, window_bounds = array<i64: 40, 1000>}, {transform_indices = @transform_1, window_bounds = array<i64: 40, 1>}, {transform_indices = @transform_2, window_bounds = array<i64: 1, 8, 128>}]} {
    %c0 = arith.constant 0 : index
    %c0_0 = arith.constant 0 : index
    %0 = vector.load %arg1[%c0, %c0_0] : memref<40x1000xf32, #tpu.memory_space<vmem>>, vector<40x1000xf32>
    %c0_1 = arith.constant 0 : index
    %c0_2 = arith.constant 0 : index
    %1 = vector.load %arg2[%c0_1, %c0_2] : memref<40x1xi32, #tpu.memory_space<vmem>>, vector<40x1xi32>
    %cst = arith.constant dense<0xFF800000> : vector<40xf32>
    %2 = vector.multi_reduction <maximumf>, %0, %cst [1] : vector<40x1000xf32> to vector<40xf32>
    %3 = vector.shape_cast %2 : vector<40xf32> to vector<40x1xf32>
    %4 = vector.broadcast %3 : vector<40x1xf32> to vector<40x1000xf32>
    %5 = arith.subf %0, %4 : vector<40x1000xf32>
    %6 = math.exp %5 : vector<40x1000xf32>
    %cst_3 = arith.constant dense<0.000000e+00> : vector<40xf32>
    %7 = vector.multi_reduction <add>, %6, %cst_3 [1] : vector<40x1000xf32> to vector<40xf32>
    %8 = vector.shape_cast %7 : vector<40xf32> to vector<40x1xf32>
    %9 = math.log %8 : vector<40x1xf32>
    %10 = arith.addf %3, %9 : vector<40x1xf32>
    %11 = tpu.iota {dimensions = array<i32: 1>} : vector<40x1000xi32>
    %12 = vector.broadcast %1 : vector<40x1xi32> to vector<40x1000xi32>
    %13 = arith.cmpi eq, %11, %12 : vector<40x1000xi32>
    %cst_4 = arith.constant 9.001000e-01 : f32
    %cst_5 = arith.constant 9.99999974E-5 : f32
    %14 = vector.broadcast %cst_4 : f32 to vector<40x1000xf32>
    %15 = vector.broadcast %cst_5 : f32 to vector<40x1000xf32>
    %16 = arith.select %13, %14, %15 : vector<40x1000xi1>, vector<40x1000xf32>
    %17 = arith.mulf %16, %0 : vector<40x1000xf32>
    %cst_6 = arith.constant dense<0.000000e+00> : vector<40xf32>
    %18 = vector.multi_reduction <add>, %17, %cst_6 [1] : vector<40x1000xf32> to vector<40xf32>
    %19 = vector.shape_cast %18 : vector<40xf32> to vector<40x1xf32>
    %20 = arith.subf %10, %19 : vector<40x1xf32>
    %21 = tpu.iota {dimensions = array<i32: 0>} : vector<40x1xi32>
    %c40_i32 = arith.constant 40 : i32
    %22 = arith.muli %arg0, %c40_i32 : i32
    %23 = vector.broadcast %22 : i32 to vector<40x1xi32>
    %24 = arith.addi %21, %23 : vector<40x1xi32>
    %c40_i32_7 = arith.constant 40 : i32
    %25 = vector.broadcast %c40_i32_7 : i32 to vector<40x1xi32>
    %26 = arith.cmpi slt, %24, %25 : vector<40x1xi32>
    %cst_8 = arith.constant 0.000000e+00 : f32
    %27 = vector.broadcast %cst_8 : f32 to vector<40x1xf32>
    %28 = arith.select %26, %20, %27 : vector<40x1xi1>, vector<40x1xf32>
    %29 = vector.shape_cast %28 : vector<40x1xf32> to vector<1x40x1xf32>
    %cst_9 = arith.constant dense<0.000000e+00> : vector<1xf32>
    %30 = vector.multi_reduction <add>, %29, %cst_9 [1, 2] : vector<1x40x1xf32> to vector<1xf32>
    %31 = vector.shape_cast %30 : vector<1xf32> to vector<1x1x1xf32>
    %32 = vector.extract %31[0, 0, 0] : f32 from vector<1x1x1xf32>
    %33 = vector.broadcast %32 : f32 to vector<1x8x128xf32>
    %c0_10 = arith.constant 0 : index
    %c0_11 = arith.constant 0 : index
    %c0_12 = arith.constant 0 : index
    %34 = vector.load %arg3[%c0_10, %c0_11, %c0_12] : memref<1x8x128xf32, #tpu.memory_space<vmem>>, vector<1x8x128xf32>
    tpu.vector_store %arg3[%c0_10, %c0_11, %c0_12], %33 {strides = array<i32>} : memref<1x8x128xf32, #tpu.memory_space<vmem>>, vector<1x8x128xf32>,
    return
  }
  func.func @transform_0(%arg0: i32) -> (i32, i32) {
    %c0_i32 = arith.constant 0 : i32
    %c0_i32_0 = arith.constant 0 : i32
    return %arg0, %c0_i32 : i32, i32
  }
  func.func @transform_1(%arg0: i32) -> (i32, i32) {
    %c0_i32 = arith.constant 0 : i32
    %c0_i32_0 = arith.constant 0 : i32
    return %arg0, %c0_i32 : i32, i32
  }
  func.func @transform_2(%arg0: i32) -> (i32, i32, i32) {
    %c0_i32 = arith.constant 0 : i32
    %c0_i32_0 = arith.constant 0 : i32
    %c0_i32_1 = arith.constant 0 : i32
    return %arg0, %c0_i32, %c0_i32_0 : i32, i32, i32
  }
}

</mosaic_0001>

<bundles_post_ra>
// kernel: tpu_custom_call.1
= control target key start
LH: loop header
LB: loop body
LE: loop exit
PB: predicated region body
PF: predicated region fallthrough
CT: control target
= control target key end

     0   :  { %7 = vsyncpa [#allocation3], 0  ;;  %s1197_s0 = inlined_call_operand.hbm [shape: f32[40,1000], index: 0, kind: input, shape index: {}]   ;;  %s1198_s1 = inlined_call_operand.vmem [shape: s32[40,1], index: 1, kind: input, shape index: {}]   ;;  %s1199_s2 = inlined_call_operand.hbm [shape: f32[1,8,128], index: 2, kind: output, shape index: {}]  }
   0x1   :  { %8 = vsyncpa [#allocation4], 0  ;;  %s13_s11 = sshll.u32 %s1197_s0, 4  ;;  %s722_s12 = smov [#allocation2]   ;;  %s14_s11 = int_to_ptr.hbm [resolvable:$true] %s13_s11 }
   0x2   :  { %s15_s13 = sshll.u32 %s722_s12, 4  ;;  %s723_s14 = smov 1024   ;;  %s16_s13 = int_to_ptr.vmem [resolvable:$true] %s15_s13 }
   0x3   :  { %s724_s15 = smov 64  }
   0x4   :  { %21 = dma.hbm_to_vmem [thread:$0]  %s14_s11, 5120, %s16_s13, [#allocation3], %s723_s14, %s723_s14, %s724_s15  }
   0x5   :  { %718 = dma.done.wait [#allocation3], 5120  }
   0x6   :  { %719 = vsyncadd [#allocation3], 4294962176  ;;  %v725_v0 = vmov 0   ;;  %v746_v1 = vld [vmem:[#allocation2 + $0x100] sm:$0xff]  ;;  %v748_v2 = vld [vmem:[#allocation2 + $0x108] sm:$0xff]  ;;  %vm79_vm0 = vcmask 850944  }
   0x7   :  { %578 = vset.pattern.permute.xlu0 %v725_v0  ;;  %577 = vset.pattern.permute.xlu2 %v725_v0  ;;  %v750_v3 = vld [vmem:[#allocation2 + $0x110] sm:$0xff]  ;;  %v114_v4 = vmax.f32 %v746_v1, %v748_v2  ;;  %v754_v5 = vld [vmem:[#allocation2 + $0x118] sm:$0xff]  ;;  %v756_v6 = vld [vmem:[#allocation2 + $0x80] sm:$0xff]  ;;  %s559_s26 = sshll.u32 %s1199_s2, 4  ;;  %s727_s27 = smov [#allocation5]   ;;  %s560_s26 = int_to_ptr.hbm [resolvable:$true] %s559_s26 }
   0x8   :  { %579 = vset.pattern.permute.xlu1 %v725_v0  ;;  %1217 = vst [vmem:[#allocation8_spill] sm:$0xff] %v756_v6  ;;  %v759_v8 = vld [vmem:[#allocation2 + $0x88] sm:$0xff]  ;;  %v761_v9 = vld [vmem:[#allocation2 + $0x90] sm:$0xff]  ;;  %v763_v10 = vld [vmem:[#allocation2 + $0x120] sm:$0xff]  ;;  %s557_s28 = sshll.u32 %s727_s27, 4  ;;  %s558_s28 = int_to_ptr.vmem [resolvable:$true] %s557_s28 }
   0x9   :  { %v115_v7 = vmax.f32 %v114_v4, %v750_v3  ;;  %1218 = vst [vmem:[#allocation9_spill] sm:$0xff] %v759_v8  ;;  %v94_v11 = vmax.f32 %v756_v6, %v759_v8  ;;  %v768_v13 = vld [vmem:[#allocation2 + $0x98] sm:$0xff]  ;;  %v770_v14 = vld [vmem:[#allocation2] sm:$0xff]  ;;  %v772_v15 = vld [vmem:[#allocation2 + $0x8] sm:$0xff] }
   0xa   :  { %1219 = vst [vmem:[#allocation10_spill] sm:$0xff] %v761_v9  ;;  %v774_v16 = vld [vmem:[#allocation2 + $0x128] sm:$0xff]  ;;  %v776_v17 = vld [vmem:[#allocation2 + $0x130] sm:$0xff]  ;;  %v73_v20 = vmax.f32 %v770_v14, %v772_v15  ;;  %v783_v21 = vld [vmem:[#allocation2 + $0x138] sm:$0xff] }
   0xb   :  { %v116_v12 = vmax.f32 %v115_v7, %v754_v5  ;;  %1220 = vst [vmem:[#allocation11_spill] sm:$0xff] %v768_v13  ;;  %v95_v18 = vmax.f32 %v94_v11, %v761_v9  ;;  %v779_v19 = vld [vmem:[#allocation2 + $0x10] sm:$0xff]  ;;  %v786_v23 = vld [vmem:[#allocation2 + $0xa0] sm:$0xff]  ;;  %v788_v24 = vld [vmem:[#allocation2 + $0x18] sm:$0xff]  ;;  %v120_v35 = vsel %vm79_vm0, %v783_v21, -inf }
   0xc   :  { %1221 = vst [vmem:[#allocation12_spill] sm:$0xff] %v786_v23  ;;  %v74_v26 = vmax.f32 %v73_v20, %v779_v19  ;;  %v792_v27 = vld [vmem:[#allocation2 + $0xc0] sm:$0xff]  ;;  %v794_v28 = vld [vmem:[#allocation2 + $0xc8] sm:$0xff]  ;;  %v796_v29 = vld [vmem:[#allocation2 + $0xd0] sm:$0xff] }
   0xd   :  { %v117_v22 = vmax.f32 %v116_v12, %v763_v10  ;;  %v96_v25 = vmax.f32 %v95_v18, %v768_v13  ;;  %v799_v31 = vld [vmem:[#allocation2 + $0xa8] sm:$0xff]  ;;  %v801_v32 = vld [vmem:[#allocation2 + $0xb0] sm:$0xff]  ;;  %v803_v33 = vld [vmem:[#allocation2 + $0x20] sm:$0xff]  ;;  %v104_v34 = vmax.f32 %v792_v27, %v794_v28 }
   0xe   :  { %1222 = vst [vmem:[#allocation13_spill] sm:$0xff] %v799_v31  ;;  %v809_v36 = vld [vmem:[#allocation2 + $0xb8] sm:$0xff]  ;;  %v75_v38 = vmax.f32 %v74_v26, %v788_v24  ;;  %v815_v40 = vld [vmem:[#allocation2 + $0x40] sm:$0xff]  ;;  %v818_v42 = vld [vmem:[#allocation2 + $0x28] sm:$0xff] }
   0xf   :  { %v118_v30 = vmax.f32 %v117_v22, %v774_v16  ;;  %1223 = vst [vmem:[#allocation14_spill] sm:$0xff] %v801_v32  ;;  %v97_v37 = vmax.f32 %v96_v25, %v786_v23  ;;  %v813_v39 = vld [vmem:[#allocation2 + $0xd8] sm:$0xff]  ;;  %v105_v43 = vmax.f32 %v104_v34, %v796_v29  ;;  %v821_v44 = vld [vmem:[#allocation2 + $0x48] sm:$0xff]  ;;  %v823_v45 = vld [vmem:[#allocation2 + $0x50] sm:$0xff]  ;;  %v100_v52 = vsel %vm79_vm0, %v809_v36, -inf }
  0x10   :  { %1224 = vst [vmem:[#allocation15_spill] sm:$0xff] %v809_v36  ;;  %v826_v47 = vld [vmem:[#allocation2 + $0x38] sm:$0xff]  ;;  %v76_v48 = vmax.f32 %v75_v38, %v803_v33  ;;  %v829_v49 = vld [vmem:[#allocation2 + $0xe0] sm:$0xff]  ;;  %v84_v50 = vmax.f32 %v815_v40, %v821_v44  ;;  %v835_v53 = vld [vmem:[#allocation2 + $0x30] sm:$0xff] }
  0x11   :  { %v119_v41 = vmax.f32 %v118_v30, %v776_v17  ;;  %v98_v46 = vmax.f32 %v97_v37, %v799_v31  ;;  %v106_v54 = vmax.f32 %v105_v43, %v813_v39  ;;  %v838_v55 = vld [vmem:[#allocation2 + $0x58] sm:$0xff]  ;;  %v842_v58 = vld [vmem:[#allocation2 + $0xe8] sm:$0xff]  ;;  %v80_v60 = vsel %vm79_vm0, %v826_v47, -inf  ;;  %v848_v62 = vld [vmem:[#allocation2 + $0x60] sm:$0xff] }
  0x12   :  { %v77_v57 = vmax.f32 %v76_v48, %v818_v42  ;;  %1225 = vst [vmem:[#allocation16_spill] sm:$0xff] %v842_v58  ;;  %v85_v59 = vmax.f32 %v84_v50, %v823_v45  ;;  %v851_v4 = vld [vmem:[#allocation2 + $0xf0] sm:$0xff]  ;;  %v853_v7 = vld [vmem:[#allocation2 + $0xf8] sm:$0xff]  ;;  %v857_v18 = vld [vmem:[#allocation2 + $0x68] sm:$0xff] }
  0x13   :  { %v121_v51 = vmax.f32 %v119_v41, %v120_v35  ;;  %v99_v56 = vmax.f32 %v98_v46, %v801_v32  ;;  %v107_v61 = vmax.f32 %v106_v54, %v829_v49  ;;  %1226 = vst [vmem:[#allocation17_spill] sm:$0xff] %v848_v62  ;;  %v859_v22 = vld [vmem:[#allocation2 + $0x78] sm:$0xff]  ;;  %v110_v30 = vsel %vm79_vm0, %v853_v7, -inf  ;;  %v865_v34 = vld [vmem:[#allocation2 + $0x70] sm:$0xff]  ;;  %v68_v46 = vld [vmem:[%s1198_s1] sm:$0xff] }
  0x14   :  { %v78_v0 = vmax.f32 %v77_v57, %v835_v53  ;;  %1227 = vst [vmem:[#allocation18_spill] sm:$0xff] %v851_v4  ;;  %v86_v11 = vmax.f32 %v85_v59, %v838_v55  ;;  %v90_v37 = vsel %vm79_vm0, %v859_v22, -inf  ;;  %v71_v48 = vld [vmem:[%s1198_s1 + $0x18] sm:$0xff]  ;;  %v69_v50 = vld [vmem:[%s1198_s1 + $0x8] sm:$0xff] }
  0x15   :  { %122 = vmax.xlane.f32.xlu2 %v121_v51  ;;  %v101_v63 = vmax.f32 %v99_v56, %v100_v52  ;;  %1228 = vst [vmem:[#allocation19_spill] sm:$0xff] %v853_v7  ;;  %v108_v12 = vmax.f32 %v107_v61, %v842_v58  ;;  %v70_v51 = vld [vmem:[%s1198_s1 + $0x10] sm:$0xff]  ;;  %v72_v52 = vld [vmem:[%s1198_s1 + $0x20] sm:$0xff]  ;;  %v309_v56 = vlaneseq }
  0x16   :  { %1229 = vst [vmem:[#allocation20_spill] sm:$0xff] %v857_v18  ;;  %v81_v20 = vmax.f32 %v78_v0, %v80_v60  ;;  %v87_v25 = vmax.f32 %v86_v11, %v848_v62 }
  0x17   :  { %102 = vmax.xlane.f32.xlu1 %v101_v63  ;;  %v109_v26 = vmax.f32 %v108_v12, %v851_v4  ;;  %1230 = vst [vmem:[#allocation21_spill] sm:$0xff] %v865_v34 }
  0x18   :  { %82 = vmax.xlane.f32.xlu0 %v81_v20  ;;  %v88_v35 = vmax.f32 %v87_v25, %v857_v18 }
  0x19   :  { %v111_v38 = vmax.f32 %v109_v26, %v110_v30 }
  0x1a   :  { %v89_v41 = vmax.f32 %v88_v35, %v865_v34 }
  0x1c   :  { %v91_v43 = vmax.f32 %v89_v41, %v90_v37 }
  0x1f   :  { %112 = vmax.xlane.f32.xlu1 %v111_v38 }
  0x20   :  { %92 = vmax.xlane.f32.xlu0 %v91_v43 }
  0x2d   :  { %319 = vperm.xlu2 %577, %v68_v46  }
  0x34   :  { %322 = vperm.xlu0 %578, %v69_v50  }
  0x35   :  { %328 = vperm.xlu2 %577, %v71_v48  }
  0x38   :  { %325 = vperm.xlu1 %579, %v70_v51  }
  0x3d   :  { %331 = vperm.xlu2 %577, %v72_v52  }
  0x88   :  { %v888_v57 = vpop.xlane.xlu2 %122 }
  0x8a   :  { %v886_v54 = vpop.xlane.xlu1 %102 }
  0x8b   :  { %1231 = vst [vmem:[#allocation22_spill] sm:$0xff] %v886_v54  ;;  %v140_v59 = vsub.f32 %v756_v6, %v886_v54  ;;  %v141_v60 = vsub.f32 %v759_v8, %v886_v54  ;;  %v142_v61 = vsub.f32 %v761_v9, %v886_v54  ;;  %v143_v63 = vsub.f32 %v768_v13, %v886_v54  ;;  %v898_v0 = vpop.xlane.xlu0 %82 }
  0x8c   :  { %1232 = vst [vmem:[#allocation23_spill] sm:$0xff] %v898_v0  ;;  %v144_v11 = vsub.f32 %v786_v23, %v886_v54  ;;  %v145_v12 = vsub.f32 %v799_v31, %v886_v54  ;;  %v146_v26 = vsub.f32 %v801_v32, %v886_v54  ;;  %v147_v38 = vsub.f32 %v809_v36, %v886_v54 }
  0x8d   :  { %v196_v30 = vmul.f32 1.442695, %v140_v59  ;;  %v198_v35 = vmul.f32 1.442695, %v141_v60  ;;  %v200_v37 = vmul.f32 1.442695, %v142_v61  ;;  %v124_v43 = vsub.f32 %v770_v14, %v898_v0 }
  0x8e   :  { %v202_v41 = vmul.f32 1.442695, %v143_v63  ;;  %v204_v48 = vmul.f32 1.442695, %v144_v11  ;;  %v206_v50 = vmul.f32 1.442695, %v145_v12  ;;  %v125_v51 = vsub.f32 %v772_v15, %v898_v0 }
  0x8f   :  { %580 = vpow2.f32 %v196_v30  ;;  %v126_v52 = vsub.f32 %v779_v19, %v898_v0  ;;  %v127_v59 = vsub.f32 %v788_v24, %v898_v0  ;;  %v128_v60 = vsub.f32 %v803_v33, %v898_v0 }
  0x90   :  { %582 = vpow2.f32 %v198_v35  ;;  %v208_v61 = vmul.f32 1.442695, %v146_v26  ;;  %v129_v63 = vsub.f32 %v818_v42, %v898_v0  ;;  %v926_v11 = vand.u32 127, %v309_v56 }
  0x91   :  { %584 = vpow2.f32 %v200_v37  ;;  %v210_v30 = vmul.f32 1.442695, %v147_v38  ;;  %v130_v35 = vsub.f32 %v835_v53, %v898_v0  ;;  %v131_v37 = vsub.f32 %v826_v47, %v898_v0 }
  0x92   :  { %v928_v12 = vpop.xlane.xlu1 %112  ;;  %586 = vpow2.f32 %v202_v41  ;;  %v164_v26 = vmul.f32 1.442695, %v124_v43  ;;  %v166_v25 = vmul.f32 1.442695, %v125_v51  ;;  %v168_v20 = vmul.f32 1.442695, %v126_v52 }
  0x93   :  { %1233 = vst [vmem:[#allocation24_spill] sm:$0xff] %v928_v12  ;;  %588 = vpow2.f32 %v204_v48  ;;  %v170_v56 = vmul.f32 1.442695, %v127_v59  ;;  %v172_v54 = vmul.f32 1.442695, %v128_v60  ;;  %v148_v38 = vsub.f32 %v792_v27, %v928_v12  ;;  %v952_v23 = vpop.xlane.xlu0 %92 }
  0x94   :  { %590 = vpow2.f32 %v206_v50  ;;  %v174_v41 = vmul.f32 1.442695, %v129_v63  ;;  %v149_v32 = vsub.f32 %v794_v28, %v928_v12  ;;  %v150_v48 = vsub.f32 %v796_v29, %v928_v12 }
  0x95   :  { %v581_v36 = vpop.eup %580  ;;  %592 = vpow2.f32 %v208_v61  ;;  %v151_v43 = vsub.f32 %v813_v39, %v928_v12  ;;  %v152_v50 = vsub.f32 %v829_v49, %v928_v12  ;;  %v153_v59 = vsub.f32 %v842_v58, %v928_v12 }
  0x96   :  { %v583_v46 = vpop.eup %582  ;;  %594 = vpow2.f32 %v210_v30  ;;  %v154_v60 = vsub.f32 %v851_v4, %v928_v12  ;;  %v176_v63 = vmul.f32 1.442695, %v130_v35  ;;  %v178_v30 = vmul.f32 1.442695, %v131_v37 }
  0x97   :  { %v585_v51 = vpop.eup %584  ;;  %v264_v52 = vadd.f32 %v583_v46, %v581_v36  ;;  %596 = vpow2.f32 %v164_v26  ;;  %v155_v0 = vsub.f32 %v853_v7, %v928_v12  ;;  %v212_v36 = vmul.f32 1.442695, %v148_v38 }
  0x98   :  { %v587_v61 = vpop.eup %586  ;;  %598 = vpow2.f32 %v166_v25  ;;  %v214_v46 = vmul.f32 1.442695, %v149_v32  ;;  %v216_v9 = vmul.f32 1.442695, %v150_v48  ;;  %v218_v8 = vmul.f32 1.442695, %v151_v43 }
  0x99   :  { %v589_v31 = vpop.eup %588  ;;  %v265_v13 = vadd.f32 %v585_v51, %v264_v52  ;;  %600 = vpow2.f32 %v168_v20  ;;  %v220_v6 = vmul.f32 1.442695, %v152_v50  ;;  %v222_v25 = vmul.f32 1.442695, %v153_v59 }
  0x9a   :  { %v591_v26 = vpop.eup %590  ;;  %602 = vpow2.f32 %v170_v56  ;;  %v224_v35 = vmul.f32 1.442695, %v154_v60  ;;  %v226_v12 = vmul.f32 1.442695, %v155_v0  ;;  %v132_v7 = vsub.f32 %v815_v40, %v952_v23 }
  0x9b   :  { %v593_v4 = vpop.eup %592  ;;  %v266_v58 = vadd.f32 %v587_v61, %v265_v13  ;;  %604 = vpow2.f32 %v172_v54  ;;  %v133_v20 = vsub.f32 %v821_v44, %v952_v23  ;;  %v134_v56 = vsub.f32 %v823_v45, %v952_v23 }
  0x9c   :  { %v595_v37 = vpop.eup %594  ;;  %606 = vpow2.f32 %v174_v41  ;;  %v135_v13 = vsub.f32 %v838_v55, %v952_v23  ;;  %v136_v0 = vsub.f32 %v848_v62, %v952_v23  ;;  %v137_v41 = vsub.f32 %v857_v18, %v952_v23 }
  0x9d   :  { %v597_v32 = vpop.eup %596  ;;  %v267_v38 = vadd.f32 %v589_v31, %v266_v58  ;;  %608 = vpow2.f32 %v176_v63  ;;  %v138_v48 = vsub.f32 %v865_v34, %v952_v23  ;;  %v270_v58 = vsel %vm79_vm0, %v595_v37, 0.0 }
  0x9e   :  { %v599_v54 = vpop.eup %598  ;;  %610 = vpow2.f32 %v178_v30  ;;  %v139_v52 = vsub.f32 %v859_v22, %v952_v23  ;;  %v180_v59 = vmul.f32 1.442695, %v132_v7  ;;  %v182_v60 = vmul.f32 1.442695, %v133_v20 }
  0x9f   :  { %v601_v43 = vpop.eup %600  ;;  %v268_v31 = vadd.f32 %v591_v26, %v267_v38  ;;  %v244_v50 = vadd.f32 %v599_v54, %v597_v32  ;;  %612 = vpow2.f32 %v212_v36  ;;  %v184_v18 = vmul.f32 1.442695, %v134_v56 }
  0xa0   :  { %v603_v51 = vpop.eup %602  ;;  %614 = vpow2.f32 %v214_v46  ;;  %v186_v34 = vmul.f32 1.442695, %v135_v13  ;;  %v188_v26 = vmul.f32 1.442695, %v136_v0  ;;  %v190_v38 = vmul.f32 1.442695, %v137_v41  ;;  %v320_v13 = vpop.permute.xlu2 %319 }
  0xa1   :  { %v605_v61 = vpop.eup %604  ;;  %v269_v63 = vadd.f32 %v593_v4, %v268_v31  ;;  %v245_v30 = vadd.f32 %v601_v43, %v244_v50  ;;  %616 = vpow2.f32 %v216_v9  ;;  %v971_v46 = vmul.f32 1.442695, %v138_v48 }
  0xa2   :  { %v607_v62 = vpop.eup %606  ;;  %618 = vpow2.f32 %v218_v8  ;;  %v974_v7 = vadd.s32 128, %v926_v11  ;;  %v977_v4 = vadd.s32 256, %v926_v11  ;;  %v980_v9 = vadd.s32 384, %v926_v11 }
  0xa3   :  { %v609_v37 = vpop.eup %608  ;;  %v271_v32 = vadd.f32 %v270_v58, %v269_v63  ;;  %v246_v36 = vadd.f32 %v603_v51, %v245_v30  ;;  %620 = vpow2.f32 %v220_v6  ;;  %v983_v56 = vadd.s32 512, %v926_v11 }
  0xa4   :  { %v611_v54 = vpop.eup %610  ;;  %622 = vpow2.f32 %v222_v25  ;;  %v986_v6 = vadd.s32 640, %v926_v11  ;;  %v990_v41 = vadd.s32 768, %v926_v11  ;;  %v993_v48 = vadd.s32 896, %v926_v11 }
  0xa5   :  { %v613_v8 = vpop.eup %612  ;;  %272 = vadd.xlane.f32.xlu0 %v271_v32  ;;  %v247_v20 = vadd.f32 %v605_v61, %v246_v36  ;;  %624 = vpow2.f32 %v224_v35  ;;  %v250_v0 = vsel %vm79_vm0, %v611_v54, 0.0  ;;  %vm333_vm1 = vcmp.eq.s32.totalorder %v926_v11, %v320_v13 }
  0xa6   :  { %v615_v25 = vpop.eup %614  ;;  %626 = vpow2.f32 %v226_v12  ;;  %vm334_vm2 = vcmp.eq.s32.totalorder %v974_v7, %v320_v13  ;;  %vm335_vm3 = vcmp.eq.s32.totalorder %v977_v4, %v320_v13  ;;  %vm336_vm4 = vcmp.eq.s32.totalorder %v980_v9, %v320_v13 }
  0xa7   :  { %v617_v43 = vpop.eup %616  ;;  %v248_v31 = vadd.f32 %v607_v62, %v247_v20  ;;  %v274_v35 = vadd.f32 %v615_v25, %v613_v8  ;;  %628 = vpow2.f32 %v180_v59  ;;  %vm337_vm5 = vcmp.eq.s32.totalorder %v983_v56, %v320_v13 }
  0xa8   :  { %v619_v58 = vpop.eup %618  ;;  %630 = vpow2.f32 %v182_v60  ;;  %vm338_vm6 = vcmp.eq.s32.totalorder %v986_v6, %v320_v13  ;;  %v726_v62 = vmov 0.0001   ;;  %vm339_vm7 = vcmp.eq.s32.totalorder %v990_v41, %v320_v13 }
  0xa9   :  { %v621_v12 = vpop.eup %620  ;;  %v249_v50 = vadd.f32 %v609_v37, %v248_v31  ;;  %v275_v51 = vadd.f32 %v617_v43, %v274_v35  ;;  %632 = vpow2.f32 %v184_v18  ;;  %v373_v59 = vsel %vm333_vm1, 0.9001, %v726_v62 }
  0xaa   :  { %v623_v61 = vpop.eup %622  ;;  %634 = vpow2.f32 %v186_v34  ;;  %v374_v32 = vsel %vm334_vm2, 0.9001, %v726_v62  ;;  %v375_v18 = vsel %vm335_vm3, 0.9001, %v726_v62  ;;  %v194_v34 = vmul.f32 1.442695, %v139_v52 }
  0xab   :  { %v625_v60 = vpop.eup %624  ;;  %v251_v63 = vadd.f32 %v250_v0, %v249_v50  ;;  %v276_v30 = vadd.f32 %v619_v58, %v275_v51  ;;  %636 = vpow2.f32 %v188_v26  ;;  %vm340_vm8 = vcmp.eq.s32.totalorder %v993_v48, %v320_v13 }
  0xac   :  { %v627_v37 = vpop.eup %626  ;;  %638 = vpow2.f32 %v190_v38  ;;  %v376_v8 = vsel %vm336_vm4, 0.9001, %v726_v62  ;;  %v377_v20 = vsel %vm337_vm5, 0.9001, %v726_v62  ;;  %v378_v52 = vsel %vm338_vm6, 0.9001, %v726_v62 }
  0xad   :  { %v629_v36 = vpop.eup %628  ;;  %252 = vadd.xlane.f32.xlu1 %v251_v63  ;;  %v277_v54 = vadd.f32 %v621_v12, %v276_v30  ;;  %v413_v26 = vmul.f32 %v373_v59, %v770_v14  ;;  %v414_v0 = vmul.f32 %v374_v32, %v772_v15  ;;  %v415_v43 = vmul.f32 %v375_v18, %v779_v19 }
  0xae   :  { %v631_v25 = vpop.eup %630  ;;  %v379_v58 = vsel %vm339_vm7, 0.9001, %v726_v62  ;;  %v380_v12 = vsel %vm340_vm8, 0.9001, %v726_v62  ;;  %v280_v51 = vsel %vm79_vm0, %v627_v37, 0.0  ;;  %640 = vpow2.f32 %v194_v34 }
  0xaf   :  { %v633_v38 = vpop.eup %632  ;;  %v278_v31 = vadd.f32 %v623_v61, %v277_v54  ;;  %v254_v35 = vadd.f32 %v631_v25, %v629_v36  ;;  %v416_v14 = vmul.f32 %v376_v8, %v788_v24  ;;  %v453_v15 = vadd.f32 %v414_v0, %v413_v26  ;;  %v1050_v0 = vpop.permute.xlu2 %328 }
  0xb0   :  { %v635_v50 = vpop.eup %634  ;;  %642 = vpow2.f32 %v971_v46  ;;  %v417_v61 = vmul.f32 %v377_v20, %v803_v33  ;;  %v420_v30 = vmul.f32 %v380_v12, %v826_v47  ;;  %v160_v13 = vsub.f32 %v763_v10, %v888_v57 }
  0xb1   :  { %v279_v59 = vadd.f32 %v625_v60, %v278_v31  ;;  %v255_v19 = vadd.f32 %v633_v38, %v254_v35  ;;  %v637_v63 = vpop.eup %636  ;;  %v454_v32 = vadd.f32 %v453_v15, %v415_v43  ;;  %v161_v18 = vsub.f32 %v774_v16, %v888_v57 }
  0xb2   :  { %v639_v37 = vpop.eup %638  ;;  %v1234_v60 = vsub.f32 %v746_v1, %v888_v57  ;;  %v1235_v33 = vsub.f32 %v748_v2, %v888_v57  ;;  %v418_v47 = vmul.f32 %v378_v52, %v818_v42  ;;  %v1236_v8 = vsub.f32 %v750_v3, %v888_v57 }
  0xb3   :  { %v281_v34 = vadd.f32 %v280_v51, %v279_v59  ;;  %v256_v24 = vadd.f32 %v635_v50, %v255_v19  ;;  %v455_v54 = vadd.f32 %v454_v32, %v416_v14  ;;  %v1237_v25 = vsub.f32 %v754_v5, %v888_v57 }
  0xb4   :  { %v228_v46 = vmul.f32 1.442695, %v1234_v60  ;;  %v230_v36 = vmul.f32 1.442695, %v1235_v33  ;;  %v232_v20 = vmul.f32 1.442695, %v1236_v8  ;;  %v419_v38 = vmul.f32 %v379_v58, %v835_v53  ;;  %v641_v42 = vpop.eup %640 }
  0xb5   :  { %v234_v26 = vmul.f32 1.442695, %v1237_v25  ;;  %282 = vadd.xlane.f32.xlu1 %v281_v34  ;;  %v257_v43 = vadd.f32 %v637_v63, %v256_v24  ;;  %v163_v31 = vsub.f32 %v783_v21, %v888_v57  ;;  %v456_v52 = vadd.f32 %v455_v54, %v417_v61 }
  0xb6   :  { %644 = vpow2.f32 %v228_v46  ;;  %v162_v35 = vsub.f32 %v776_v17, %v888_v57  ;;  %v236_v12 = vmul.f32 1.442695, %v160_v13  ;;  %v643_v50 = vpop.eup %642  ;;  %v459_v14 = vsel %vm79_vm0, %v420_v30, 0.0 }
  0xb7   :  { %646 = vpow2.f32 %v230_v36  ;;  %v258_v51 = vadd.f32 %v639_v37, %v257_v43  ;;  %v238_v15 = vmul.f32 1.442695, %v161_v18  ;;  %v457_v59 = vadd.f32 %v456_v52, %v418_v47  ;;  %v1075_v47 = vpop.permute.xlu0 %322 }
  0xb8   :  { %648 = vpow2.f32 %v232_v20  ;;  %vm357_vm9 = vcmp.eq.s32.totalorder %v926_v11, %v1050_v0  ;;  %vm358_vm10 = vcmp.eq.s32.totalorder %v974_v7, %v1050_v0  ;;  %v260_v58 = vsel %vm79_vm0, %v641_v42, 0.0 }
  0xb9   :  { %650 = vpow2.f32 %v234_v26  ;;  %v259_v53 = vadd.f32 %v643_v50, %v258_v51  ;;  %v242_v19 = vmul.f32 1.442695, %v163_v31  ;;  %vm359_vm11 = vcmp.eq.s32.totalorder %v977_v4, %v1050_v0  ;;  %v1238_v50 = vld [vmem:[#allocation16_spill] sm:$0xff] }
  0xba   :  { %v458_v61 = vadd.f32 %v457_v59, %v419_v38  ;;  %652 = vpow2.f32 %v236_v12  ;;  %v240_v63 = vmul.f32 1.442695, %v162_v35  ;;  %vm360_vm12 = vcmp.eq.s32.totalorder %v980_v9, %v1050_v0 }
  0xbb   :  { %v261_v32 = vadd.f32 %v260_v58, %v259_v53  ;;  %v397_v13 = vsel %vm357_vm9, 0.9001, %v726_v62  ;;  %v398_v18 = vsel %vm358_vm10, 0.9001, %v726_v62  ;;  %654 = vpow2.f32 %v238_v15 }
  0xbc   :  { %v645_v30 = vpop.eup %644  ;;  %v460_v34 = vadd.f32 %v459_v14, %v458_v61  ;;  %vm361_vm13 = vcmp.eq.s32.totalorder %v983_v56, %v1050_v0  ;;  %v399_v24 = vsel %vm359_vm11, 0.9001, %v726_v62  ;;  %656 = vpow2.f32 %v242_v19  ;;  %v1239_v61 = vld [vmem:[#allocation18_spill] sm:$0xff] }
  0xbd   :  { %v647_v37 = vpop.eup %646  ;;  %262 = vadd.xlane.f32.xlu2 %v261_v32  ;;  %vm362_vm14 = vcmp.eq.s32.totalorder %v986_v6, %v1050_v0  ;;  %v400_v33 = vsel %vm360_vm12, 0.9001, %v726_v62  ;;  %658 = vpow2.f32 %v240_v63  ;;  %v437_v54 = vmul.f32 %v397_v13, %v792_v27  ;;  %v326_v32 = vpop.permute.xlu1 %325 }
  0xbe   :  { %v649_v60 = vpop.eup %648  ;;  %v284_v46 = vadd.f32 %v647_v37, %v645_v30  ;;  %461 = vadd.xlane.f32.xlu1 %v460_v34  ;;  %v438_v8 = vmul.f32 %v398_v18, %v794_v28  ;;  %v439_v20 = vmul.f32 %v399_v24, %v796_v29  ;;  %vm363_vm15 = vcmp.eq.s32.totalorder %v990_v41, %v1050_v0 }
  0xbf   :  { %v651_v36 = vpop.eup %650  ;;  %vm364_vm1 = vcmp.eq.s32.totalorder %v993_v48, %v1050_v0  ;;  %v401_v26 = vsel %vm361_vm13, 0.9001, %v726_v62  ;;  %v402_v38 = vsel %vm362_vm14, 0.9001, %v726_v62  ;;  %v440_v27 = vmul.f32 %v400_v33, %v813_v39 }
  0xc0   :  { %v285_v25 = vadd.f32 %v649_v60, %v284_v46  ;;  %v653_v43 = vpop.eup %652  ;;  %v483_v28 = vadd.f32 %v438_v8, %v437_v54  ;;  %vm341_vm2 = vcmp.eq.s32.totalorder %v926_v11, %v1075_v47  ;;  %vm342_vm3 = vcmp.eq.s32.totalorder %v974_v7, %v1075_v47 }
  0xc1   :  { %vm343_vm4 = vcmp.eq.s32.totalorder %v977_v4, %v1075_v47  ;;  %v655_v29 = vpop.eup %654  ;;  %v403_v0 = vsel %vm363_vm15, 0.9001, %v726_v62  ;;  %v404_v42 = vsel %vm364_vm1, 0.9001, %v726_v62  ;;  %v441_v52 = vmul.f32 %v401_v26, %v829_v49  ;;  %v1240_v49 = vld [vmem:[#allocation19_spill] sm:$0xff] }
  0xc2   :  { %v286_v31 = vadd.f32 %v651_v36, %v285_v25  ;;  %v484_v35 = vadd.f32 %v483_v28, %v439_v20  ;;  %v657_v39 = vpop.eup %656  ;;  %v442_v51 = vmul.f32 %v402_v38, %v1238_v50  ;;  %vm344_vm5 = vcmp.eq.s32.totalorder %v980_v9, %v1075_v47  ;;  %v1241_v38 = vld [vmem:[#allocation17_spill] sm:$0xff] }
  0xc3   :  { %v659_v14 = vpop.eup %658  ;;  %v381_v59 = vsel %vm341_vm2, 0.9001, %v726_v62  ;;  %v382_v53 = vsel %vm342_vm3, 0.9001, %v726_v62  ;;  %v383_v58 = vsel %vm343_vm4, 0.9001, %v726_v62  ;;  %v443_v63 = vmul.f32 %v403_v0, %v1239_v61 }
  0xc4   :  { %v287_v12 = vadd.f32 %v653_v43, %v286_v31  ;;  %v485_v15 = vadd.f32 %v484_v35, %v440_v27  ;;  %v444_v30 = vmul.f32 %v404_v42, %v1240_v49  ;;  %vm345_vm6 = vcmp.eq.s32.totalorder %v983_v56, %v1075_v47  ;;  %v1242_v31 = vld [vmem:[#allocation20_spill] sm:$0xff]  ;;  %v332_v35 = vpop.permute.xlu2 %331  ;;  %v1247_v61 = vld [vmem:[#allocation11_spill] sm:$0xff] }
  0xc5   :  { %v290_v13 = vsel %vm79_vm0, %v657_v39, 0.0  ;;  %v384_v37 = vsel %vm344_vm5, 0.9001, %v726_v62  ;;  %v421_v34 = vmul.f32 %v381_v59, %v815_v40  ;;  %vm346_vm7 = vcmp.eq.s32.totalorder %v986_v6, %v1075_v47  ;;  %v1245_v59 = vld [vmem:[#allocation10_spill] sm:$0xff] }
  0xc6   :  { %v288_v19 = vadd.f32 %v655_v29, %v287_v12  ;;  %v486_v18 = vadd.f32 %v485_v15, %v441_v52  ;;  %v422_v60 = vmul.f32 %v382_v53, %v821_v44  ;;  %v423_v46 = vmul.f32 %v383_v58, %v823_v45  ;;  %v1243_v12 = vld [vmem:[#allocation8_spill] sm:$0xff]  ;;  %v1246_v58 = vld [vmem:[#allocation21_spill] sm:$0xff] }
  0xc7   :  { %vm347_vm8 = vcmp.eq.s32.totalorder %v990_v41, %v1075_v47  ;;  %vm348_vm9 = vcmp.eq.s32.totalorder %v993_v48, %v1075_v47  ;;  %v385_v36 = vsel %vm345_vm6, 0.9001, %v726_v62  ;;  %v424_v40 = vmul.f32 %v384_v37, %v838_v55 }
  0xc8   :  { %v289_v24 = vadd.f32 %v659_v14, %v288_v19  ;;  %v487_v33 = vadd.f32 %v486_v18, %v442_v51  ;;  %v463_v8 = vadd.f32 %v422_v60, %v421_v34  ;;  %vm349_vm10 = vcmp.eq.s32.totalorder %v926_v11, %v326_v32  ;;  %v1244_v14 = vld [vmem:[#allocation9_spill] sm:$0xff] }
  0xc9   :  { %v386_v44 = vsel %vm346_vm7, 0.9001, %v726_v62  ;;  %vm350_vm11 = vcmp.eq.s32.totalorder %v974_v7, %v326_v32  ;;  %vm351_vm12 = vcmp.eq.s32.totalorder %v977_v4, %v326_v32  ;;  %v489_v45 = vsel %vm79_vm0, %v444_v30, 0.0 }
  0xca   :  { %v291_v54 = vadd.f32 %v290_v13, %v289_v24  ;;  %v488_v20 = vadd.f32 %v487_v33, %v443_v63  ;;  %v388_v25 = vsel %vm348_vm9, 0.9001, %v726_v62  ;;  %v464_v26 = vadd.f32 %v463_v8, %v423_v46  ;;  %v1248_v33 = vld [vmem:[#allocation12_spill] sm:$0xff]  ;;  %v1249_v8 = vld [vmem:[#allocation13_spill] sm:$0xff] }
  0xcb   :  { %vm352_vm13 = vcmp.eq.s32.totalorder %v980_v9, %v326_v32  ;;  %v387_v55 = vsel %vm347_vm8, 0.9001, %v726_v62  ;;  %v425_v27 = vmul.f32 %v385_v36, %v1241_v38  ;;  %v389_v28 = vsel %vm349_vm10, 0.9001, %v726_v62 }
  0xcc   :  { %292 = vadd.xlane.f32.xlu2 %v291_v54  ;;  %v490_v43 = vadd.f32 %v489_v45, %v488_v20  ;;  %v426_v29 = vmul.f32 %v386_v44, %v1242_v31  ;;  %v465_v0 = vadd.f32 %v464_v26, %v424_v40  ;;  %v390_v42 = vsel %vm350_vm11, 0.9001, %v726_v62  ;;  %v1250_v45 = vld [vmem:[#allocation14_spill] sm:$0xff]  ;;  %v1251_v26 = vld [vmem:[#allocation15_spill] sm:$0xff] }
  0xcd   :  { %v391_v52 = vsel %vm351_vm12, 0.9001, %v726_v62  ;;  %v428_v39 = vmul.f32 %v388_v25, %v859_v22  ;;  %vm353_vm14 = vcmp.eq.s32.totalorder %v983_v56, %v326_v32  ;;  %v392_v47 = vsel %vm352_vm13, 0.9001, %v726_v62 }
  0xce   :  { %491 = vadd.xlane.f32.xlu1 %v490_v43  ;;  %v429_v50 = vmul.f32 %v389_v28, %v1243_v12  ;;  %v466_v51 = vadd.f32 %v465_v0, %v425_v27  ;;  %vm354_vm15 = vcmp.eq.s32.totalorder %v986_v6, %v326_v32  ;;  %v430_v15 = vmul.f32 %v390_v42, %v1244_v14 }
  0xcf   :  { %v431_v53 = vmul.f32 %v391_v52, %v1245_v59  ;;  %v427_v19 = vmul.f32 %v387_v55, %v1246_v58  ;;  %vm355_vm1 = vcmp.eq.s32.totalorder %v990_v41, %v326_v32  ;;  %vm356_vm2 = vcmp.eq.s32.totalorder %v993_v48, %v326_v32 }
  0xd0   :  { %v467_v22 = vadd.f32 %v466_v51, %v426_v29  ;;  %v432_v63 = vmul.f32 %v392_v47, %v1247_v61  ;;  %v473_v49 = vadd.f32 %v430_v15, %v429_v50  ;;  %vm365_vm3 = vcmp.eq.s32.totalorder %v926_v11, %v332_v35 }
  0xd1   :  { %v469_v30 = vsel %vm79_vm0, %v428_v39, 0.0  ;;  %v393_v13 = vsel %vm353_vm14, 0.9001, %v726_v62  ;;  %v394_v18 = vsel %vm354_vm15, 0.9001, %v726_v62  ;;  %vm366_vm4 = vcmp.eq.s32.totalorder %v974_v7, %v332_v35 }
  0xd2   :  { %v468_v37 = vadd.f32 %v467_v22, %v427_v19  ;;  %v395_v34 = vsel %vm355_vm1, 0.9001, %v726_v62  ;;  %v474_v24 = vadd.f32 %v473_v49, %v431_v53  ;;  %vm367_vm5 = vcmp.eq.s32.totalorder %v977_v4, %v332_v35 }
  0xd3   :  { %v396_v32 = vsel %vm356_vm2, 0.9001, %v726_v62  ;;  %v405_v60 = vsel %vm365_vm3, 0.9001, %v726_v62  ;;  %v406_v11 = vsel %vm366_vm4, 0.9001, %v726_v62  ;;  %v433_v36 = vmul.f32 %v393_v13, %v1248_v33 }
  0xd4   :  { %v470_v46 = vadd.f32 %v469_v30, %v468_v37  ;;  %v475_v54 = vadd.f32 %v474_v24, %v432_v63  ;;  %vm368_vm6 = vcmp.eq.s32.totalorder %v980_v9, %v332_v35  ;;  %v407_v7 = vsel %vm367_vm5, 0.9001, %v726_v62  ;;  %v1252_v63 = vld [vmem:[#allocation23_spill] sm:$0xff]  ;;  %v1253_v24 = vld [vmem:[#allocation22_spill] sm:$0xff] }
  0xd5   :  { %v445_v40 = vmul.f32 %v405_v60, %v746_v1  ;;  %v434_v20 = vmul.f32 %v394_v18, %v1249_v8  ;;  %vm369_vm7 = vcmp.eq.s32.totalorder %v983_v56, %v332_v35  ;;  %v446_v44 = vmul.f32 %v406_v11, %v748_v2 }
  0xd6   :  { %471 = vadd.xlane.f32.xlu2 %v470_v46  ;;  %v476_v4 = vadd.f32 %v475_v54, %v433_v36  ;;  %v435_v25 = vmul.f32 %v395_v34, %v1250_v45  ;;  %v436_v43 = vmul.f32 %v396_v32, %v1251_v26  ;;  %v408_v55 = vsel %vm368_vm6, 0.9001, %v726_v62 }
  0xd7   :  { %vm370_vm8 = vcmp.eq.s32.totalorder %v986_v6, %v332_v35  ;;  %v447_v9 = vmul.f32 %v407_v7, %v750_v3  ;;  %v493_v1 = vadd.f32 %v446_v44, %v445_v40  ;;  %vm372_vm9 = vcmp.eq.s32.totalorder %v993_v48, %v332_v35  ;;  %v1254_v7 = vld [vmem:[#allocation24_spill] sm:$0xff] }
  0xd8   :  { %v477_v38 = vadd.f32 %v476_v4, %v434_v20  ;;  %v409_v27 = vsel %vm369_vm7, 0.9001, %v726_v62  ;;  %vm371_vm10 = vcmp.eq.s32.totalorder %v990_v41, %v332_v35  ;;  %v448_v2 = vmul.f32 %v408_v55, %v754_v5 }
  0xd9   :  { %v494_v56 = vadd.f32 %v493_v1, %v447_v9  ;;  %v479_v31 = vsel %vm79_vm0, %v436_v43, 0.0  ;;  %v410_v29 = vsel %vm370_vm8, 0.9001, %v726_v62  ;;  %v412_v6 = vsel %vm372_vm9, 0.9001, %v726_v62 }
  0xda   :  { %v478_v28 = vadd.f32 %v477_v38, %v435_v25  ;;  %v449_v3 = vmul.f32 %v409_v27, %v763_v10  ;;  %v411_v48 = vsel %vm371_vm10, 0.9001, %v726_v62  ;;  %v450_v52 = vmul.f32 %v410_v29, %v774_v16 }
  0xdb   :  { %v495_v42 = vadd.f32 %v494_v56, %v448_v2  ;;  %v452_v41 = vmul.f32 %v412_v6, %v783_v21  ;;  %v451_v5 = vmul.f32 %v411_v48, %v776_v17 }
  0xdc   :  { %v480_v0 = vadd.f32 %v479_v31, %v478_v28 }
  0xdd   :  { %v496_v39 = vadd.f32 %v495_v42, %v449_v3  ;;  %v499_v12 = vsel %vm79_vm0, %v452_v41, 0.0  ;;  %vm531_vm0 = vcmask 7168  }
  0xde   :  { %481 = vadd.xlane.f32.xlu0 %v480_v0 }
  0xdf   :  { %v497_v35 = vadd.f32 %v496_v39, %v450_v52 }
  0xe1   :  { %v498_v47 = vadd.f32 %v497_v35, %v451_v5 }
  0xe3   :  { %v500_v50 = vadd.f32 %v499_v12, %v498_v47 }
  0xe5   :  { %501 = vadd.xlane.f32.xlu2 %v500_v50 }
 0x118   :  { %v273_v15 = vpop.xlane.xlu0 %272 }
 0x120   :  { %v253_v51 = vpop.xlane.xlu1 %252 }
 0x128   :  { %v283_v10 = vpop.xlane.xlu1 %282 }
 0x130   :  { %v263_v14 = vpop.xlane.xlu2 %262 }
 0x131   :  { %660 = vlog2.f32 %v263_v14  ;;  %v462_v58 = vpop.xlane.xlu1 %461 }
 0x132   :  { %662 = vlog2.f32 %v253_v51 }
 0x133   :  { %664 = vlog2.f32 %v273_v15 }
 0x134   :  { %666 = vlog2.f32 %v283_v10 }
 0x137   :  { %v661_v59 = vpop.eup %660 }
 0x138   :  { %v663_v16 = vpop.eup %662  ;;  %v297_v53 = vmul.f32 0.6931472, %v661_v59 }
 0x139   :  { %v295_v21 = vmul.f32 0.6931472, %v663_v16  ;;  %v665_v17 = vpop.eup %664 }
 0x13a   :  { %v305_v22 = vadd.f32 %v297_v53, %v952_v23  ;;  %v299_v61 = vmul.f32 0.6931472, %v665_v17  ;;  %v667_v13 = vpop.eup %666 }
 0x13b   :  { %v304_v49 = vadd.f32 %v295_v21, %v1252_v63  ;;  %v301_v37 = vmul.f32 0.6931472, %v667_v13 }
 0x13c   :  { %v306_v32 = vadd.f32 %v299_v61, %v1253_v24 }
 0x13d   :  { %v503_v18 = vsub.f32 %v304_v49, %v462_v58  ;;  %v307_v40 = vadd.f32 %v301_v37, %v1254_v7 }
 0x13f   :  { %v293_v62 = vpop.xlane.xlu2 %292  ;;  %v532_v46 = vsel %vm531_vm0, %v503_v18, 0.0 }
 0x140   :  { %668 = vlog2.f32 %v293_v62 }
 0x141   :  { %v492_v36 = vpop.xlane.xlu1 %491 }
 0x142   :  { %v506_v20 = vsub.f32 %v307_v40, %v492_v36 }
 0x144   :  { %v537_v25 = vsel %vm531_vm0, %v506_v20, 0.0 }
 0x146   :  { %v669_v60 = vpop.eup %668 }
 0x147   :  { %v303_v54 = vmul.f32 0.6931472, %v669_v60 }
 0x149   :  { %v472_v19 = vpop.xlane.xlu2 %471  ;;  %v308_v44 = vadd.f32 %v303_v54, %v888_v57 }
 0x14a   :  { %v504_v30 = vsub.f32 %v305_v22, %v472_v19 }
 0x14c   :  { %v533_v34 = vsel %vm531_vm0, %v504_v30, 0.0 }
 0x14d   :  { %v534_v23 = vadd.f32 %v533_v34, %v532_v46 }
 0x151   :  { %v482_v11 = vpop.xlane.xlu0 %481 }
 0x152   :  { %v505_v33 = vsub.f32 %v306_v32, %v482_v11 }
 0x154   :  { %v535_v8 = vsel %vm531_vm0, %v505_v33, 0.0 }
 0x155   :  { %v536_v4 = vadd.f32 %v535_v8, %v534_v23 }
 0x157   :  { %v538_v43 = vadd.f32 %v537_v25, %v536_v4 }
 0x158   :  { %v502_v45 = vpop.xlane.xlu2 %501 }
 0x159   :  { %v507_v26 = vsub.f32 %v308_v44, %v502_v45 }
 0x15b   :  { %v539_v55 = vsel %vm531_vm0, %v507_v26, 0.0 }
 0x15c   :  { %v540_v38 = vadd.f32 %v539_v55, %v538_v43 }
 0x15e   :  { %541 = vadd.xlane.f32.xlu0 %v540_v38 }
 0x1d1   :  { %v542_v9 = vpop.xlane.xlu0 %541 }
 0x1d2   :  { %v543_v1 = vrot.slane %v542_v9, 4 }
 0x1d4   :  { %v544_v27 = vadd.f32 %v543_v1, %v542_v9 }
 0x1d6   :  { %v545_v28 = vrot.slane %v544_v27, 2 }
 0x1d8   :  { %v546_v2 = vadd.f32 %v545_v28, %v544_v27 }
 0x1da   :  { %v547_v56 = vrot.slane %v546_v2, 1 }
 0x1dc   :  { %v548_v31 = vadd.f32 %v547_v56, %v546_v2 }
 0x1de   :  { %569 = vpush %v548_v31 }
 0x20f   :  { %s570_s29 = spop %569 }
 0x210   :  { %v550_v57 = vstv %s570_s29 }
 0x211   :  { %551 = vst [vmem:[#allocation5] sm:$0xff] %v550_v57 }
 0x212   :  { %562 = dma.vmem_to_hbm [thread:$0]  %s558_s28, 128, %s560_s26, [#allocation4]  }
 0x213   :  { %720 = dma.done.wait [#allocation4], 128  }
 0x214   :  { %721 = vsyncadd [#allocation4], 4294967168 }
 0x215   :  { %567 = vsyncpa [#allocation3], 1 }
 0x216   :  { %568 = vsyncpa [#allocation4], 1 }

</bundles_post_ra>
